<compile_context>
chip_gen: v7x
topology: tpu7x:2x2x1
jax: 0.10.0
libtpu: 0.0.40
codegen_flags: <defaults>
</compile_context>

<pallas_src>
import functools

import jax
import jax.numpy as jnp
from jax.experimental import pallas as pl
from jax.experimental.pallas import tpu as pltpu


# --------------------------------------------------------------------------- #
# Helpers
# --------------------------------------------------------------------------- #
def _round_up(x: int, m: int) -> int:
    return ((x + m - 1) // m) * m


def _pad2(x, rows: int, cols: int):
    pr, pc = rows - x.shape[0], cols - x.shape[1]
    if pr == 0 and pc == 0:
        return x
    return jnp.pad(x, ((0, pr), (0, pc)))


def _vmem_budget_bytes() -> int:
    """~85% of per-core VMEM: headroom for Mosaic internal scratch."""
    cap = 64 * 1024 * 1024  # conservative default (v7x per-TC size)
    try:
        c = int(getattr(pltpu.get_tpu_info(), "vmem_capacity_bytes", 0) or 0)
        if c > 0:
            cap = c  # 128 MiB on v5e/v6e, 64 MiB on v7x
    except Exception:
        pass
    return int(cap * 0.85)


def _resident_vmem_bytes(tm, K_pad, N_pad, mm_b, res_b, out_b):
    w_bytes = K_pad * N_pad * mm_b
    stream = tm * K_pad * mm_b + tm * N_pad * (res_b + out_b)
    vec = 3 * N_pad * 4
    # 2x: default double buffering for every operand (weight included).
    return 2 * w_bytes + 2 * stream + 2 * vec


def _ktiled_vmem_bytes(tm, tk, N_pad, mm_b, res_b, out_b):
    stream = tm * tk * mm_b + tk * N_pad * mm_b + tm * N_pad * (res_b + out_b)
    acc = tm * N_pad * 4
    vec = 3 * N_pad * 4
    return 2 * stream + acc + 2 * vec


def _pick_k_tile(K_pad: int, target: int) -> int:
    """Largest multiple-of-128 divisor of K_pad that is <= target."""
    target = max(128, min(target, K_pad))
    best = 128
    d = 128
    while d <= target:
        if K_pad % d == 0:
            best = d
        d += 128
    return best


# --------------------------------------------------------------------------- #
# Kernels
# --------------------------------------------------------------------------- #
def _ln_epilogue(x, gamma, beta, eps, n_true):
    # Single-pass statistics over the true hidden size. Padded feature columns
    # (when present) are exact zeros, so sums over the padded width equal sums
    # over the true width. Post-residual BERT activations are O(1), so the
    # E[x^2]-E[x]^2 form is numerically fine here.
    inv_n = jnp.float32(1.0 / n_true)
    s1 = jnp.sum(x, axis=-1, keepdims=True)
    s2 = jnp.sum(x * x, axis=-1, keepdims=True)
    mean = s1 * inv_n
    var = jnp.maximum(s2 * inv_n - mean * mean, 0.0)
    inv = jax.lax.rsqrt(var + eps)
    return (x - mean) * inv * gamma + beta


def _bert_output_resident_kernel(h_ref, w_ref, b_ref, r_ref, g_ref, be_ref,
                                 o_ref, *, eps: float, n_true: int):
    # Dense: (tm, K) @ (K, N) -> (tm, N); bf16 inputs, f32 MXU accumulation.
    x = jnp.dot(h_ref[...], w_ref[...], preferred_element_type=jnp.float32)
    x = x + b_ref[...].astype(jnp.float32)        # bias, broadcast (1, N)
    x = x + r_ref[...].astype(jnp.float32)        # residual add
    y = _ln_epilogue(x, g_ref[...].astype(jnp.float32),
                     be_ref[...].astype(jnp.float32), eps, n_true)
    o_ref[...] = y.astype(o_ref.dtype)


def _bert_output_ktiled_kernel(h_ref, w_ref, b_ref, r_ref, g_ref, be_ref,
                               o_ref, acc_ref, *, eps: float, n_true: int):
    k = pl.program_id(1)

    @pl.when(k == 0)
    def _():
        acc_ref[...] = jnp.zeros_like(acc_ref)

    acc_ref[...] += jnp.dot(h_ref[...], w_ref[...],
                            preferred_element_type=jnp.float32)

    @pl.when(k == pl.num_programs(1) - 1)
    def _():
        x = acc_ref[...]
        x = x + b_ref[...].astype(jnp.float32)
        x = x + r_ref[...].astype(jnp.float32)
        y = _ln_epilogue(x, g_ref[...].astype(jnp.float32),
                         be_ref[...].astype(jnp.float32), eps, n_true)
        o_ref[...] = y.astype(o_ref.dtype)


# --------------------------------------------------------------------------- #
# Public wrapper
# --------------------------------------------------------------------------- #
def make_bert_output(w, b, gamma, beta, *, eps=1e-12, tm=512,
                     matmul_dtype=jnp.bfloat16, k_tile=None,
                     force_k_tiling=False):
    """Builds a jitted BertOutput forward.

    w: [intermediate, hidden] (i.e. transposed from PyTorch's [hidden, intermediate]).
    b, gamma, beta: [hidden].
    Returns forward(hidden_states [B,S,intermediate], input_tensor [B,S,hidden]).
    """
    w = jnp.asarray(w)
    K, N = w.shape
    K_pad = _round_up(K, 128)
    N_pad = _round_up(N, 128)
    eps = float(eps)
    mm_isize = jnp.dtype(matmul_dtype).itemsize

    # One-time parameter cast/pad (cached; not on the per-call path).
    w2 = _pad2(w.astype(matmul_dtype), K_pad, N_pad)
    b2 = _pad2(jnp.asarray(b, jnp.float32).reshape(1, N), 1, N_pad)
    g2 = _pad2(jnp.asarray(gamma, jnp.float32).reshape(1, N), 1, N_pad)
    be2 = _pad2(jnp.asarray(beta, jnp.float32).reshape(1, N), 1, N_pad)

    def fwd(hidden_states, input_tensor, w2, b2, g2, be2):
        B, S, K_in = hidden_states.shape
        assert K_in == K, (K_in, K)
        assert input_tensor.shape == (B, S, N), (input_tensor.shape, (B, S, N))
        T = B * S
        out_dtype = hidden_states.dtype
        res_isize = jnp.dtype(input_tensor.dtype).itemsize
        out_isize = jnp.dtype(out_dtype).itemsize

        # Activations / residual: pad feature axes only when actually needed
        # (never for standard 128-aligned BERT configs); the token axis is
        # handled with a ragged last block (no copy).
        h = hidden_states.reshape(T, K).astype(matmul_dtype)
        if K_pad != K:
            h = jnp.pad(h, ((0, 0), (0, K_pad - K)))
        r = input_tensor.reshape(T, N)
        if N_pad != N:
            r = jnp.pad(r, ((0, 0), (0, N_pad - N)))

        # --- static tiling decisions (trace-time Python on static shapes) ---
        budget = _vmem_budget_bytes()
        tm_req = max(8, min(_round_up(tm, 8), _round_up(T, 8)))

        use_resident = not force_k_tiling
        tm_eff = tm_req
        if use_resident:
            while (tm_eff > 64 and
                   _resident_vmem_bytes(tm_eff, K_pad, N_pad, mm_isize,
                                        res_isize, out_isize) > budget):
                tm_eff = max(64, _round_up(tm_eff // 2, 8))
            if _resident_vmem_bytes(tm_eff, K_pad, N_pad, mm_isize,
                                    res_isize, out_isize) > budget:
                use_resident = False  # weight too large to keep resident

        if not use_resident:
            tm_eff = tm_req
            tk = _pick_k_tile(K_pad, int(k_tile) if k_tile else 512)
            while (tm_eff > 64 and
                   _ktiled_vmem_bytes(tm_eff, tk, N_pad, mm_isize,
                                      res_isize, out_isize) > budget):
                tm_eff = max(64, _round_up(tm_eff // 2, 8))

        cost = pl.CostEstimate(
            flops=2 * T * K_pad * N_pad + 10 * T * N_pad,
            transcendentals=T,
            bytes_accessed=int(h.size * mm_isize + K_pad * N_pad * mm_isize
                               + r.size * res_isize + T * N_pad * out_isize
                               + 3 * N_pad * 4),
        )

        if use_resident:
            grid = (pl.cdiv(T, tm_eff),)
            kernel = functools.partial(_bert_output_resident_kernel,
                                       eps=eps, n_true=N)
            in_specs = [
                pl.BlockSpec((tm_eff, K_pad), lambda i: (i, 0)),  # activations
                pl.BlockSpec((K_pad, N_pad), lambda i: (0, 0)),   # weight (resident)
                pl.BlockSpec((1, N_pad), lambda i: (0, 0)),       # bias
                pl.BlockSpec((tm_eff, N_pad), lambda i: (i, 0)),  # residual
                pl.BlockSpec((1, N_pad), lambda i: (0, 0)),       # gamma
                pl.BlockSpec((1, N_pad), lambda i: (0, 0)),       # beta
            ]
            out_specs = pl.BlockSpec((tm_eff, N_pad), lambda i: (i, 0))
            scratch_shapes = ()
            dims = ("parallel",)
        else:
            grid = (pl.cdiv(T, tm_eff), K_pad // tk)
            kernel = functools.partial(_bert_output_ktiled_kernel,
                                       eps=eps, n_true=N)
            in_specs = [
                pl.BlockSpec((tm_eff, tk), lambda i, k: (i, k)),     # activations
                pl.BlockSpec((tk, N_pad), lambda i, k: (k, 0)),      # weight slab
                pl.BlockSpec((1, N_pad), lambda i, k: (0, 0)),       # bias
                pl.BlockSpec((tm_eff, N_pad), lambda i, k: (i, 0)),  # residual
                pl.BlockSpec((1, N_pad), lambda i, k: (0, 0)),       # gamma
                pl.BlockSpec((1, N_pad), lambda i, k: (0, 0)),       # beta
            ]
            out_specs = pl.BlockSpec((tm_eff, N_pad), lambda i, k: (i, 0))
            scratch_shapes = (pltpu.VMEM((tm_eff, N_pad), jnp.float32),)
            dims = ("parallel", "arbitrary")

        out = pl.pallas_call(
            kernel,
            out_shape=jax.ShapeDtypeStruct((T, N_pad), out_dtype),
            grid=grid,
            in_specs=in_specs,
            out_specs=out_specs,
            scratch_shapes=scratch_shapes,
            compiler_params=pltpu.CompilerParams(
                dimension_semantics=dims,
                vmem_limit_bytes=budget),
            cost_estimate=cost,
        )(h, w2, b2, r, g2, be2)

        if N_pad != N:
            out = out[:, :N]
        return out.reshape(B, S, N)

    fwd_jit = jax.jit(fwd)

    def forward(hidden_states, input_tensor):
        return fwd_jit(hidden_states, input_tensor, w2, b2, g2, be2)

    return forward


# --------------------------------------------------------------------------- #
# Self-test
# --------------------------------------------------------------------------- #
def _reference(hidden_states, input_tensor, w, b, gamma, beta, eps):
    # Pure-JAX reference with the same bf16-rounded matmul operands
    # (f32 accumulation) and f32 LayerNorm.
    h_bf = hidden_states.astype(jnp.bfloat16).astype(jnp.float32)
    w_bf = w.astype(jnp.bfloat16).astype(jnp.float32)
    x = jnp.einsum("bsi,ih->bsh", h_bf, w_bf) + b + input_tensor
    mean = x.mean(-1, keepdims=True)
    var = ((x - mean) ** 2).mean(-1, keepdims=True)
    return (x - mean) * jax.lax.rsqrt(var + eps) * gamma + beta


if __name__ == "__main__":
    key = jax.random.PRNGKey(0)
    eps = 1e-12

    # Case 1: tiny BERT-like config with an unaligned hidden size (exercises the
    # padded-feature path and the resident-weight kernel).
    B, S, H, I = 2, 8, 32, 128
    k1, k2, k3, k4, k5, k6, key = jax.random.split(key, 7)
    hs = jax.random.normal(k1, (B, S, I), dtype=jnp.float32)
    res = jax.random.normal(k2, (B, S, H), dtype=jnp.float32)
    w_pt = jax.random.normal(k3, (H, I), dtype=jnp.float32) * 0.02   # nn.Linear weight [H, I]
    b_pt = jax.random.normal(k4, (H,), dtype=jnp.float32) * 0.02
    gamma = 1.0 + 0.1 * jax.random.normal(k5, (H,), dtype=jnp.float32)
    beta = 0.1 * jax.random.normal(k6, (H,), dtype=jnp.float32)

    fwd = make_bert_output(w_pt.T, b_pt, gamma, beta, eps=eps)
    out = jax.block_until_ready(fwd(hs, res))
    ref = _reference(hs, res, w_pt.T, b_pt, gamma, beta, eps)
    assert out.shape == (B, S, H)
    err1 = float(jnp.max(jnp.abs(out - ref)))
    assert err1 < 5e-3, f"case1 max err {err1}"

    # Case 2: 128-aligned features (no padding copies), ragged token tail, and
    # the K-tiled accumulator path forced on (multi-step K reduction).
    B2, S2, H2, I2 = 2, 12, 128, 256
    k1, k2, k3, k4, k5, k6, key = jax.random.split(key, 7)
    hs2 = jax.random.normal(k1, (B2, S2, I2), dtype=jnp.float32)
    res2 = jax.random.normal(k2, (B2, S2, H2), dtype=jnp.float32)
    w_pt2 = jax.random.normal(k3, (H2, I2), dtype=jnp.float32) * 0.02
    b_pt2 = jax.random.normal(k4, (H2,), dtype=jnp.float32) * 0.02
    gamma2 = 1.0 + 0.1 * jax.random.normal(k5, (H2,), dtype=jnp.float32)
    beta2 = 0.1 * jax.random.normal(k6, (H2,), dtype=jnp.float32)

    fwd2 = make_bert_output(w_pt2.T, b_pt2, gamma2, beta2, eps=eps,
                            tm=16, force_k_tiling=True, k_tile=128)
    out2 = jax.block_until_ready(fwd2(hs2, res2))
    ref2 = _reference(hs2, res2, w_pt2.T, b_pt2, gamma2, beta2, eps)
    assert out2.shape == (B2, S2, H2)
    err2 = float(jnp.max(jnp.abs(out2 - ref2)))
    assert err2 < 5e-3, f"case2 max err {err2}"

    print("KERNEL_OK")
</pallas_src>

<mosaic_0001>
module attributes {stable_mosaic.version = 11 : i64} {
  func.func @_bert_output_resident_kernel(%arg0: i32, %arg1: memref<16x128xbf16, #tpu.memory_space<vmem>>, %arg2: memref<128x128xbf16, #tpu.memory_space<vmem>>, %arg3: memref<1x128xf32, #tpu.memory_space<vmem>>, %arg4: memref<16x128xf32, #tpu.memory_space<vmem>>, %arg5: memref<1x128xf32, #tpu.memory_space<vmem>>, %arg6: memref<1x128xf32, #tpu.memory_space<vmem>>, %arg7: memref<16x128xf32, #tpu.memory_space<vmem>>) attributes {dimension_semantics = [#tpu.dimension_semantics<parallel>], iteration_bounds = array<i64: 1>, scalar_prefetch = 0 : i64, scratch_operands = 0 : i64, tpu.core_type = #tpu.core_type<tc>, window_params = [{transform_indices = @transform_0, window_bounds = array<i64: 16, 128>}, {pipeline_mode = #tpu.pipeline_mode<synchronous>, transform_indices = @transform_1, window_bounds = array<i64: 128, 128>}, {pipeline_mode = #tpu.pipeline_mode<synchronous>, transform_indices = @transform_2, window_bounds = array<i64: 1, 128>}, {transform_indices = @transform_3, window_bounds = array<i64: 16, 128>}, {pipeline_mode = #tpu.pipeline_mode<synchronous>, transform_indices = @transform_4, window_bounds = array<i64: 1, 128>}, {pipeline_mode = #tpu.pipeline_mode<synchronous>, transform_indices = @transform_5, window_bounds = array<i64: 1, 128>}, {transform_indices = @transform_6, window_bounds = array<i64: 16, 128>}]} {
    %c0 = arith.constant 0 : index
    %c0_0 = arith.constant 0 : index
    %0 = vector.load %arg1[%c0, %c0_0] : memref<16x128xbf16, #tpu.memory_space<vmem>>, vector<16x128xbf16>
    %c0_1 = arith.constant 0 : index
    %c0_2 = arith.constant 0 : index
    %1 = vector.load %arg2[%c0_1, %c0_2] : memref<128x128xbf16, #tpu.memory_space<vmem>>, vector<128x128xbf16>
    %cst = arith.constant dense<0.000000e+00> : vector<16x128xf32>
    %2 = tpu.matmul %0, %1, %cst {dimension_numbers = #tpu.dot_dimension_numbers<[1], [0], [0], [1], [0, 0, 1, 1], [], []>} : vector<16x128xbf16>, vector<128x128xbf16>, vector<16x128xf32> -> vector<16x128xf32>
    %c0_3 = arith.constant 0 : index
    %c0_4 = arith.constant 0 : index
    %3 = vector.load %arg3[%c0_3, %c0_4] : memref<1x128xf32, #tpu.memory_space<vmem>>, vector<1x128xf32>
    %4 = vector.broadcast %3 : vector<1x128xf32> to vector<16x128xf32>
    %5 = arith.addf %2, %4 : vector<16x128xf32>
    %c0_5 = arith.constant 0 : index
    %c0_6 = arith.constant 0 : index
    %6 = vector.load %arg4[%c0_5, %c0_6] : memref<16x128xf32, #tpu.memory_space<vmem>>, vector<16x128xf32>
    %7 = arith.addf %5, %6 : vector<16x128xf32>
    %c0_7 = arith.constant 0 : index
    %c0_8 = arith.constant 0 : index
    %8 = vector.load %arg5[%c0_7, %c0_8] : memref<1x128xf32, #tpu.memory_space<vmem>>, vector<1x128xf32>
    %c0_9 = arith.constant 0 : index
    %c0_10 = arith.constant 0 : index
    %9 = vector.load %arg6[%c0_9, %c0_10] : memref<1x128xf32, #tpu.memory_space<vmem>>, vector<1x128xf32>
    %cst_11 = arith.constant dense<0.000000e+00> : vector<16xf32>
    %10 = vector.multi_reduction <add>, %7, %cst_11 [1] : vector<16x128xf32> to vector<16xf32>
    %11 = vector.shape_cast %10 : vector<16xf32> to vector<16x1xf32>
    %12 = arith.mulf %7, %7 : vector<16x128xf32>
    %cst_12 = arith.constant dense<0.000000e+00> : vector<16xf32>
    %13 = vector.multi_reduction <add>, %12, %cst_12 [1] : vector<16x128xf32> to vector<16xf32>
    %14 = vector.shape_cast %13 : vector<16xf32> to vector<16x1xf32>
    %cst_13 = arith.constant 3.125000e-02 : f32
    %15 = vector.broadcast %cst_13 : f32 to vector<16x1xf32>
    %16 = arith.mulf %11, %15 : vector<16x1xf32>
    %cst_14 = arith.constant 3.125000e-02 : f32
    %17 = vector.broadcast %cst_14 : f32 to vector<16x1xf32>
    %18 = arith.mulf %14, %17 : vector<16x1xf32>
    %19 = arith.mulf %16, %16 : vector<16x1xf32>
    %20 = arith.subf %18, %19 : vector<16x1xf32>
    %cst_15 = arith.constant 0.000000e+00 : f32
    %21 = vector.broadcast %cst_15 : f32 to vector<16x1xf32>
    %22 = arith.maximumf %20, %21 : vector<16x1xf32>
    %cst_16 = arith.constant 9.99999996E-13 : f32
    %23 = vector.broadcast %cst_16 : f32 to vector<16x1xf32>
    %24 = arith.addf %22, %23 : vector<16x1xf32>
    %25 = math.rsqrt %24 : vector<16x1xf32>
    %26 = vector.broadcast %16 : vector<16x1xf32> to vector<16x128xf32>
    %27 = arith.subf %7, %26 : vector<16x128xf32>
    %28 = vector.broadcast %25 : vector<16x1xf32> to vector<16x128xf32>
    %29 = arith.mulf %27, %28 : vector<16x128xf32>
    %30 = vector.broadcast %8 : vector<1x128xf32> to vector<16x128xf32>
    %31 = arith.mulf %29, %30 : vector<16x128xf32>
    %32 = vector.broadcast %9 : vector<1x128xf32> to vector<16x128xf32>
    %33 = arith.addf %31, %32 : vector<16x128xf32>
    %c0_17 = arith.constant 0 : index
    %c0_18 = arith.constant 0 : index
    %34 = vector.load %arg7[%c0_17, %c0_18] : memref<16x128xf32, #tpu.memory_space<vmem>>, vector<16x128xf32>
    tpu.vector_store %arg7[%c0_17, %c0_18], %33 {strides = array<i32>} : memref<16x128xf32, #tpu.memory_space<vmem>>, vector<16x128xf32>,
    return
  }
  func.func @transform_0(%arg0: i32) -> (i32, i32) {
    %c0_i32 = arith.constant 0 : i32
    %c0_i32_0 = arith.constant 0 : i32
    return %arg0, %c0_i32 : i32, i32
  }
  func.func @transform_1(%arg0: i32) -> (i32, i32) {
    %c0_i32 = arith.constant 0 : i32
    %c0_i32_0 = arith.constant 0 : i32
    %c0_i32_1 = arith.constant 0 : i32
    return %c0_i32, %c0_i32_0 : i32, i32
  }
  func.func @transform_2(%arg0: i32) -> (i32, i32) {
    %c0_i32 = arith.constant 0 : i32
    %c0_i32_0 = arith.constant 0 : i32
    %c0_i32_1 = arith.constant 0 : i32
    return %c0_i32, %c0_i32_0 : i32, i32
  }
  func.func @transform_3(%arg0: i32) -> (i32, i32) {
    %c0_i32 = arith.constant 0 : i32
    %c0_i32_0 = arith.constant 0 : i32
    return %arg0, %c0_i32 : i32, i32
  }
  func.func @transform_4(%arg0: i32) -> (i32, i32) {
    %c0_i32 = arith.constant 0 : i32
    %c0_i32_0 = arith.constant 0 : i32
    %c0_i32_1 = arith.constant 0 : i32
    return %c0_i32, %c0_i32_0 : i32, i32
  }
  func.func @transform_5(%arg0: i32) -> (i32, i32) {
    %c0_i32 = arith.constant 0 : i32
    %c0_i32_0 = arith.constant 0 : i32
    %c0_i32_1 = arith.constant 0 : i32
    return %c0_i32, %c0_i32_0 : i32, i32
  }
  func.func @transform_6(%arg0: i32) -> (i32, i32) {
    %c0_i32 = arith.constant 0 : i32
    %c0_i32_0 = arith.constant 0 : i32
    return %arg0, %c0_i32 : i32, i32
  }
}

</mosaic_0001>

<bundles_post_ra>
// kernel: fwd.1
= control target key start
LH: loop header
LB: loop body
LE: loop exit
PB: predicated region body
PF: predicated region fallthrough
CT: control target
= control target key end

     0   :  { %v256_v0 = vmov 0.0   ;;  %vm257_vm0 = vmmov 0   ;;  %s341_s1 = inlined_call_operand.vmem [shape: bf16[128,128], index: 1, kind: input, shape index: {}]   ;;  %s342_s0 = inlined_call_operand.vmem [shape: bf16[16,128], index: 0, kind: input, shape index: {}]   ;;  %s343_s2 = inlined_call_operand.vmem [shape: f32[1,128], index: 2, kind: input, shape index: {}]   ;;  %s344_s3 = inlined_call_operand.vmem [shape: f32[16,128], index: 3, kind: input, shape index: {}]   ;;  %s345_s4 = inlined_call_operand.vmem [shape: f32[1,128], index: 4, kind: input, shape index: {}]   ;;  %s346_s5 = inlined_call_operand.vmem [shape: f32[1,128], index: 5, kind: input, shape index: {}]   ;;  %s347_s6 = inlined_call_operand.vmem [shape: f32[16,128], index: 6, kind: output, shape index: {}]  }
   0x1   :  { %221 = vmatprep.subr.bf16.mxu0 %v256_v0  ;;  %v243_v1 = vld [vmem:[%s341_s1] sm:$0xff]   ;;  %237 = vmatprep.mubr.msk.bf16.mxu0 %vm257_vm0, %v256_v0  ;;  %v244_v2 = vld [vmem:[%s341_s1 + $0x8] sm:$0xff]   ;;  %v245_v3 = vld [vmem:[%s341_s1 + $0x10] sm:$0xff]  }
   0x2   :  { %222 = vmatpush3.bf16.msra.mxu0 %v243_v1  ;;  %v246_v4 = vld [vmem:[%s341_s1 + $0x18] sm:$0xff]   ;;  %v247_v5 = vld [vmem:[%s341_s1 + $0x20] sm:$0xff]   ;;  %v248_v6 = vld [vmem:[%s341_s1 + $0x28] sm:$0xff]  }
   0x3   :  { %223 = vmatprep.subr.bf16.mxu0 %v256_v0  ;;  %v249_v7 = vld [vmem:[%s341_s1 + $0x30] sm:$0xff]   ;;  %v250_v8 = vld [vmem:[%s341_s1 + $0x38] sm:$0xff]   ;;  %v251_v9 = vld [vmem:[%s342_s0] sm:$0xff]  }
   0x4   :  { %v200_v10 = vld [vmem:[%s343_s2] ss:$0 sm:$0xff]  ;;  %v145_v16 = vld [vmem:[%s344_s3 + $0x8] sm:$0xff] }
   0x5   :  { %v144_v12 = vld [vmem:[%s344_s3] sm:$0xff] }
   0x6   :  { %224 = vmatpush3.bf16.msra.mxu0 %v244_v2  ;;  %v210_v41 = vld [vmem:[%s345_s4] ss:$0 sm:$0xff] }
   0x7   :  { %225 = vmatprep.subr.bf16.mxu0 %v256_v0  ;;  %v211_v43 = vld [vmem:[%s346_s5] ss:$0 sm:$0xff] }
   0xa   :  { %226 = vmatpush3.bf16.msra.mxu0 %v245_v3 }
   0xb   :  { %227 = vmatprep.subr.bf16.mxu0 %v256_v0 }
   0xe   :  { %228 = vmatpush3.bf16.msra.mxu0 %v246_v4 }
   0xf   :  { %229 = vmatprep.subr.bf16.mxu0 %v256_v0 }
  0x12   :  { %230 = vmatpush3.bf16.msra.mxu0 %v247_v5 }
  0x13   :  { %231 = vmatprep.subr.bf16.mxu0 %v256_v0 }
  0x16   :  { %232 = vmatpush3.bf16.msra.mxu0 %v248_v6 }
  0x17   :  { %233 = vmatprep.subr.bf16.mxu0 %v256_v0 }
  0x1a   :  { %234 = vmatpush3.bf16.msra.mxu0 %v249_v7 }
  0x1b   :  { %235 = vmatprep.subr.bf16.mxu0 %v256_v0 }
  0x1e   :  { %236 = vmatpush3.bf16.msra.mxu0 %v250_v8 }
  0x21   :  { %238 = vmatmul.mubr.bf16.vlgmr.msra.gmra.mrb[0].mxu0 %v251_v9 }
  0xf4   :  { %v137_v11 = vpop.f32.mrb[0].mxu0 }
  0xf5   :  { %v138_v13 = vadd.f32 %v200_v10, %v137_v11  ;;  %v239_v14 = vpop.f32.mrb[1].mxu0 }
  0xf6   :  { %v140_v15 = vpop.f32.mrb[2].mxu0 }
  0xf7   :  { %v146_v17 = vadd.f32 %v144_v12, %v138_v13  ;;  %v141_v18 = vadd.f32 %v200_v10, %v140_v15  ;;  %v240_v19 = vpop.f32.mrb[3].mxu0 }
  0xf9   :  { %v147_v20 = vadd.f32 %v145_v16, %v141_v18  ;;  %150 = vadd.xlane.f32.xlu0 %v146_v17  ;;  %v154_v21 = vmul.f32 %v146_v17, %v146_v17 }
  0xfb   :  { %156 = vadd.xlane.f32.xlu1 %v154_v21  ;;  %v155_v22 = vmul.f32 %v147_v20, %v147_v20 }
  0xfd   :  { %152 = vadd.xlane.f32.xlu0 %v147_v20 }
  0xff   :  { %158 = vadd.xlane.f32.xlu1 %v155_v22 }
 0x186   :  { %v151_v23 = vpop.xlane.xlu0 %150 }
 0x187   :  { %v160_v24 = vmul.f32 0.03125, %v151_v23 }
 0x188   :  { %v157_v25 = vpop.xlane.xlu1 %156 }
 0x189   :  { %v164_v26 = vmul.f32 %v160_v24, %v160_v24  ;;  %v162_v27 = vmul.f32 0.03125, %v157_v25  ;;  %v174_v39 = vsub.f32 %v146_v17, %v160_v24 }
 0x18a   :  { %v153_v28 = vpop.xlane.xlu0 %152 }
 0x18b   :  { %v166_v29 = vsub.f32 %v162_v27, %v164_v26  ;;  %v161_v30 = vmul.f32 0.03125, %v153_v28 }
 0x18c   :  { %v159_v31 = vpop.xlane.xlu1 %158 }
 0x18d   :  { %v168_v32 = vmax.f32 %v166_v29, 0.0  ;;  %v165_v33 = vmul.f32 %v161_v30, %v161_v30  ;;  %v163_v34 = vmul.f32 0.03125, %v159_v31  ;;  %v175_v45 = vsub.f32 %v147_v20, %v161_v30 }
 0x18f   :  { %v170_v35 = vadd.f32 1e-12, %v168_v32  ;;  %v167_v36 = vsub.f32 %v163_v34, %v165_v33 }
 0x191   :  { %252 = vrsqrt.f32 %v170_v35  ;;  %v169_v37 = vmax.f32 %v167_v36, 0.0 }
 0x193   :  { %v171_v38 = vadd.f32 1e-12, %v169_v37 }
 0x195   :  { %254 = vrsqrt.f32 %v171_v38 }
 0x19b   :  { %v253_v40 = vpop.eup %252 }
 0x19c   :  { %v176_v42 = vmul.f32 %v253_v40, %v174_v39 }
 0x19e   :  { %v184_v44 = vmul.f32 %v210_v41, %v176_v42 }
 0x19f   :  { %v255_v46 = vpop.eup %254 }
 0x1a0   :  { %v192_v47 = vadd.f32 %v211_v43, %v184_v44  ;;  %v177_v48 = vmul.f32 %v255_v46, %v175_v45 }
 0x1a2   :  { %194 = vst [vmem:[%s347_s6] sm:$0xff] %v192_v47  ;;  %v185_v49 = vmul.f32 %v210_v41, %v177_v48 }
 0x1a4   :  { %v193_v50 = vadd.f32 %v211_v43, %v185_v49 }
 0x1a6   :  { %195 = vst [vmem:[%s347_s6 + $0x8] sm:$0xff] %v193_v50 }

</bundles_post_ra>
